<compile_context>
chip_gen: v5e
topology: v5e:2x2
jax: 0.10.0
libtpu: 0.0.40
codegen_flags: <defaults>
</compile_context>

<pallas_src>
import functools

import jax
import jax.numpy as jnp
from jax.experimental import pallas as pl
from jax.experimental.pallas import tpu as pltpu

_LANE = 128
_QUANT = 16 * _LANE          # tile quantum along S (16 sublanes x 128 lanes; safe for f32/bf16)
_MAX_TILE_S = 1 << 20        # hard cap on per-channel elements per tile


def _round_up(x, m):
    return (x + m - 1) // m * m


def _vmem_capacity_bytes():
    try:
        return int(pltpu.get_tpu_info().vmem_capacity_bytes)
    except Exception:
        return 64 * 1024 * 1024     # conservative fallback (v7x per-core VMEM)


def _dice_kernel(x_ref, t_ref, dsc_ref, org_ref, *, eps, approx):
    """Accumulate per-channel dice-term sums and organ sizes for one tile.

    x_ref, t_ref : (C, R, 128) VMEM tiles in their native dtype (R = tile_s/128)
    dsc_ref      : (C, 128) f32 resident output block: sum of 2*x*t/(x+t+eps)
    org_ref      : (C, 128) f32 resident output block: count of (t == 1)
    """
    n = pl.program_id(1)
    s = pl.program_id(2)

    # Fresh accumulators at the start of every parallel slice.
    @pl.when(jnp.logical_and(n == 0, s == 0))
    def _init():
        dsc_ref[...] = jnp.zeros_like(dsc_ref)
        org_ref[...] = jnp.zeros_like(org_ref)

    x = x_ref[...].astype(jnp.float32)
    t = t_ref[...].astype(jnp.float32)

    num = 2.0 * x * t
    den = x + t + eps
    if approx:
        # EUP reciprocal keeps the divide off the VALU critical path.
        term = num * pl.reciprocal(den, approx=True)
    else:
        term = num / den

    # Sublane-direction reductions (VPU vreg adds + tiny tail) into lane-wide
    # f32 accumulators; the final cross-lane reduce happens once, in the wrapper.
    dsc_ref[...] += jnp.sum(term, axis=1)
    org_ref[...] += jnp.sum((t == 1.0).astype(jnp.float32), axis=1)


def _dice_partials(inputs, targets, *, eps, num_parallel, max_tile_s,
                   vmem_limit_bytes, approx_reciprocal):
    """Returns (dsc_part, org_part), each (P, C, 128) f32 partial sums."""
    N, C, D, H, W = inputs.shape
    S = D * H * W

    # Free reshapes only — no transpose, no dtype cast in HBM.
    x = inputs.reshape(N, C, S)
    t = targets.reshape(N, C, S)

    # ---- choose tile size against the VMEM budget --------------------------
    cap = _vmem_capacity_bytes()
    if vmem_limit_bytes is None:
        vmem_limit_bytes = int(min(0.75 * cap, 96 * 1024 * 1024))
    # VMEM bytes needed per (channel x element) of a tile:
    #   2 pipeline buffers x (x + t) input bytes  +  ~5 live f32 elementwise temps
    per_elem = 2 * (x.dtype.itemsize + t.dtype.itemsize) + 5 * 4
    budget = int(0.85 * vmem_limit_bytes)
    tile_s = max(_QUANT, (budget // (C * per_elem)) // _QUANT * _QUANT)
    tile_s = min(tile_s, _MAX_TILE_S, _round_up(S, _QUANT))
    if max_tile_s is not None:
        tile_s = min(tile_s, max(_QUANT, max_tile_s // _QUANT * _QUANT))

    num_tiles = pl.cdiv(S, tile_s)
    P = max(1, min(int(num_parallel), num_tiles))
    num_tiles = _round_up(num_tiles, P)
    tiles_per_p = num_tiles // P
    s_pad = num_tiles * tile_s

    # Zero padding is exact: 2*0*0/(0+0+eps) == 0 and (0 == 1) is False.
    if s_pad != S:
        x = jnp.pad(x, ((0, 0), (0, 0), (0, s_pad - S)))
        t = jnp.pad(t, ((0, 0), (0, 0), (0, s_pad - S)))

    rows = s_pad // _LANE
    tile_rows = tile_s // _LANE
    x = x.reshape(N, C, rows, _LANE)
    t = t.reshape(N, C, rows, _LANE)

    kernel = functools.partial(_dice_kernel, eps=eps, approx=approx_reciprocal)

    in_map = lambda p, n, s: (n, 0, p * tiles_per_p + s, 0)
    out_map = lambda p, n, s: (p, 0, 0)

    dsc_part, org_part = pl.pallas_call(
        kernel,
        out_shape=(
            jax.ShapeDtypeStruct((P, C, _LANE), jnp.float32),
            jax.ShapeDtypeStruct((P, C, _LANE), jnp.float32),
        ),
        grid_spec=pltpu.PrefetchScalarGridSpec(
            num_scalar_prefetch=0,
            grid=(P, N, tiles_per_p),
            in_specs=[
                pl.BlockSpec((None, C, tile_rows, _LANE), in_map),
                pl.BlockSpec((None, C, tile_rows, _LANE), in_map),
            ],
            out_specs=[
                pl.BlockSpec((None, C, _LANE), out_map),
                pl.BlockSpec((None, C, _LANE), out_map),
            ],
        ),
        compiler_params=pltpu.CompilerParams(
            dimension_semantics=("parallel", "arbitrary", "arbitrary"),
            vmem_limit_bytes=int(vmem_limit_bytes),
        ),
    )(x, t)
    return dsc_part, org_part


def dice_coefficient(inputs, targets, *, eps=1e-4, return_per_channel_dsc=False,
                     num_parallel=2, max_tile_s=None, vmem_limit_bytes=None,
                     approx_reciprocal=True):
    """Matches DiceCoefficient.forward (reduce_method='mean')."""
    dsc_part, org_part = _dice_partials(
        inputs, targets, eps=eps, num_parallel=num_parallel,
        max_tile_s=max_tile_s, vmem_limit_bytes=vmem_limit_bytes,
        approx_reciprocal=approx_reciprocal)
    dsc_sum = jnp.sum(dsc_part, axis=(0, 2))       # (C,)
    org_sum = jnp.sum(org_part, axis=(0, 2))       # (C,)
    per_channel = dsc_sum / (org_sum + eps)
    dsc_avg = jnp.mean(per_channel)
    if return_per_channel_dsc:
        return dsc_avg, per_channel
    return dsc_avg


def dice_loss(inputs, targets, *, eps=1e-4, return_per_channel_dsc=False,
              num_parallel=2, max_tile_s=None, vmem_limit_bytes=None,
              approx_reciprocal=True):
    """Matches DiceLoss.forward: 1 - mean_over_channels(per-channel DSC)."""
    out = dice_coefficient(
        inputs, targets, eps=eps, return_per_channel_dsc=return_per_channel_dsc,
        num_parallel=num_parallel, max_tile_s=max_tile_s,
        vmem_limit_bytes=vmem_limit_bytes, approx_reciprocal=approx_reciprocal)
    if return_per_channel_dsc:
        dsc_avg, per_channel = out
        return 1.0 - dsc_avg, per_channel
    return 1.0 - out


def _dice_loss_ref(inputs, targets, eps=1e-4):
    """Pure-JAX reference mirroring the PyTorch module."""
    x = inputs.astype(jnp.float32)
    t = targets.astype(jnp.float32)
    dsc = jnp.sum(2.0 * x * t / (x + t + eps), axis=(0, 2, 3, 4))
    org = jnp.sum((t == 1.0).astype(jnp.float32), axis=(0, 2, 3, 4))
    per_channel = dsc / (org + eps)
    return 1.0 - jnp.mean(per_channel), per_channel


if __name__ == "__main__":
    # Small deterministic 5-D inputs: (N, C, D, H, W)
    N, C, D, H, W = 2, 4, 8, 16, 32
    key = jax.random.PRNGKey(0)
    k1, k2 = jax.random.split(key)

    # "predictions" in [0, 1] and binary targets, streamed as bf16 (native dtype).
    inputs = jax.nn.sigmoid(
        jax.random.normal(k1, (N, C, D, H, W), jnp.float32)).astype(jnp.bfloat16)
    targets = (jax.random.uniform(k2, (N, C, D, H, W)) > 0.5).astype(jnp.bfloat16)

    # Default config: tile sized against the VMEM budget (single tile here).
    loss, per_channel = dice_loss(inputs, targets, eps=1e-4,
                                  return_per_channel_dsc=True)
    loss = jax.block_until_ready(loss)
    per_channel = jax.block_until_ready(per_channel)

    # Forced multi-tile + 2-way parallel split: exercises the grid /
    # accumulator-init / partial-combine path that large volumes hit.
    loss_multi = dice_loss(inputs, targets, eps=1e-4,
                           max_tile_s=2048, num_parallel=2)
    loss_multi = jax.block_until_ready(loss_multi)

    ref_loss, ref_pc = _dice_loss_ref(inputs, targets, eps=1e-4)

    assert loss.shape == () and per_channel.shape == (C,)
    assert bool(jnp.isfinite(loss))
    # Loose tolerance accounts for the EUP approx reciprocal (~1e-3 relative).
    assert bool(jnp.allclose(loss, ref_loss, rtol=5e-3, atol=2e-3))
    assert bool(jnp.allclose(per_channel, ref_pc, rtol=5e-3, atol=2e-3))
    assert bool(jnp.allclose(loss_multi, ref_loss, rtol=5e-3, atol=2e-3))

    print("KERNEL_OK")
</pallas_src>

<mosaic_0001>
module attributes {stable_mosaic.version = 11 : i64} {
  func.func @_dice_kernel(%arg0: i32, %arg1: i32, %arg2: i32, %arg3: memref<1x4x32x128xbf16, #tpu.memory_space<vmem>>, %arg4: memref<1x4x32x128xbf16, #tpu.memory_space<vmem>>, %arg5: memref<1x4x128xf32, #tpu.memory_space<vmem>>, %arg6: memref<1x4x128xf32, #tpu.memory_space<vmem>>) attributes {dimension_semantics = [#tpu.dimension_semantics<parallel>, #tpu.dimension_semantics<arbitrary>, #tpu.dimension_semantics<arbitrary>], iteration_bounds = array<i64: 1, 2, 1>, scalar_prefetch = 0 : i64, scratch_operands = 0 : i64, tpu.core_type = #tpu.core_type<tc>, window_params = [{transform_indices = @transform_0, window_bounds = array<i64: 1, 4, 32, 128>}, {transform_indices = @transform_1, window_bounds = array<i64: 1, 4, 32, 128>}, {transform_indices = @transform_2, window_bounds = array<i64: 1, 4, 128>}, {transform_indices = @transform_3, window_bounds = array<i64: 1, 4, 128>}]} {
    %c0_i32 = arith.constant 0 : i32
    %0 = arith.cmpi eq, %arg1, %c0_i32 : i32
    %c0_i32_0 = arith.constant 0 : i32
    %1 = arith.cmpi eq, %arg2, %c0_i32_0 : i32
    %2 = arith.andi %0, %1 : i1
    %3 = arith.extui %2 : i1 to i32
    %c0_i32_1 = arith.constant 0 : i32
    %4 = arith.cmpi ne, %3, %c0_i32_1 : i32
    scf.if %4 {
      %cst_25 = arith.constant 0.000000e+00 : f32
      %37 = vector.broadcast %cst_25 : f32 to vector<4x128xf32>
      %c0_26 = arith.constant 0 : index
      %c0_27 = arith.constant 0 : index
      %c0_28 = arith.constant 0 : index
      %38 = vector.load %arg5[%c0_26, %c0_27, %c0_28] : memref<1x4x128xf32, #tpu.memory_space<vmem>>, vector<1x4x128xf32>
      %39 = vector.shape_cast %38 : vector<1x4x128xf32> to vector<4x128xf32>
      %40 = vector.shape_cast %37 : vector<4x128xf32> to vector<1x4x128xf32>
      tpu.vector_store %arg5[%c0_26, %c0_27, %c0_28], %40 {strides = array<i32>} : memref<1x4x128xf32, #tpu.memory_space<vmem>>, vector<1x4x128xf32>,
      %cst_29 = arith.constant 0.000000e+00 : f32
      %41 = vector.broadcast %cst_29 : f32 to vector<4x128xf32>
      %c0_30 = arith.constant 0 : index
      %c0_31 = arith.constant 0 : index
      %c0_32 = arith.constant 0 : index
      %42 = vector.load %arg6[%c0_30, %c0_31, %c0_32] : memref<1x4x128xf32, #tpu.memory_space<vmem>>, vector<1x4x128xf32>
      %43 = vector.shape_cast %42 : vector<1x4x128xf32> to vector<4x128xf32>
      %44 = vector.shape_cast %41 : vector<4x128xf32> to vector<1x4x128xf32>
      tpu.vector_store %arg6[%c0_30, %c0_31, %c0_32], %44 {strides = array<i32>} : memref<1x4x128xf32, #tpu.memory_space<vmem>>, vector<1x4x128xf32>,
    } else {
    }
    %c0 = arith.constant 0 : index
    %c0_2 = arith.constant 0 : index
    %c0_3 = arith.constant 0 : index
    %c0_4 = arith.constant 0 : index
    %5 = vector.load %arg3[%c0, %c0_2, %c0_3, %c0_4] : memref<1x4x32x128xbf16, #tpu.memory_space<vmem>>, vector<1x4x32x128xbf16>
    %6 = vector.shape_cast %5 : vector<1x4x32x128xbf16> to vector<4x32x128xbf16>
    %7 = arith.extf %6 : vector<4x32x128xbf16> to vector<4x32x128xf32>
    %c0_5 = arith.constant 0 : index
    %c0_6 = arith.constant 0 : index
    %c0_7 = arith.constant 0 : index
    %c0_8 = arith.constant 0 : index
    %8 = vector.load %arg4[%c0_5, %c0_6, %c0_7, %c0_8] : memref<1x4x32x128xbf16, #tpu.memory_space<vmem>>, vector<1x4x32x128xbf16>
    %9 = vector.shape_cast %8 : vector<1x4x32x128xbf16> to vector<4x32x128xbf16>
    %10 = arith.extf %9 : vector<4x32x128xbf16> to vector<4x32x128xf32>
    %cst = arith.constant 2.000000e+00 : f32
    %11 = vector.broadcast %cst : f32 to vector<4x32x128xf32>
    %12 = arith.mulf %11, %7 : vector<4x32x128xf32>
    %13 = arith.mulf %12, %10 : vector<4x32x128xf32>
    %14 = arith.addf %7, %10 : vector<4x32x128xf32>
    %cst_9 = arith.constant 9.99999974E-5 : f32
    %15 = vector.broadcast %cst_9 : f32 to vector<4x32x128xf32>
    %16 = arith.addf %14, %15 : vector<4x32x128xf32>
    %17 = tpu.reciprocal %16 {approx = true} : vector<4x32x128xf32> -> vector<4x32x128xf32>
    %18 = arith.mulf %13, %17 : vector<4x32x128xf32>
    %c0_10 = arith.constant 0 : index
    %c0_11 = arith.constant 0 : index
    %c0_12 = arith.constant 0 : index
    %19 = vector.load %arg5[%c0_10, %c0_11, %c0_12] : memref<1x4x128xf32, #tpu.memory_space<vmem>>, vector<1x4x128xf32>
    %20 = vector.shape_cast %19 : vector<1x4x128xf32> to vector<4x128xf32>
    %cst_13 = arith.constant dense<0.000000e+00> : vector<4x128xf32>
    %21 = vector.multi_reduction <add>, %18, %cst_13 [1] : vector<4x32x128xf32> to vector<4x128xf32>
    %22 = arith.addf %20, %21 : vector<4x128xf32>
    %c0_14 = arith.constant 0 : index
    %c0_15 = arith.constant 0 : index
    %c0_16 = arith.constant 0 : index
    %23 = vector.load %arg5[%c0_14, %c0_15, %c0_16] : memref<1x4x128xf32, #tpu.memory_space<vmem>>, vector<1x4x128xf32>
    %24 = vector.shape_cast %23 : vector<1x4x128xf32> to vector<4x128xf32>
    %25 = vector.shape_cast %22 : vector<4x128xf32> to vector<1x4x128xf32>
    tpu.vector_store %arg5[%c0_14, %c0_15, %c0_16], %25 {strides = array<i32>} : memref<1x4x128xf32, #tpu.memory_space<vmem>>, vector<1x4x128xf32>,
    %c0_17 = arith.constant 0 : index
    %c0_18 = arith.constant 0 : index
    %c0_19 = arith.constant 0 : index
    %26 = vector.load %arg6[%c0_17, %c0_18, %c0_19] : memref<1x4x128xf32, #tpu.memory_space<vmem>>, vector<1x4x128xf32>
    %27 = vector.shape_cast %26 : vector<1x4x128xf32> to vector<4x128xf32>
    %cst_20 = arith.constant 1.000000e+00 : f32
    %28 = vector.broadcast %cst_20 : f32 to vector<4x32x128xf32>
    %29 = arith.cmpf oeq, %10, %28 : vector<4x32x128xf32>
    %30 = arith.extui %29 : vector<4x32x128xi1> to vector<4x32x128xi32>
    %31 = arith.sitofp %30 : vector<4x32x128xi32> to vector<4x32x128xf32>
    %cst_21 = arith.constant dense<0.000000e+00> : vector<4x128xf32>
    %32 = vector.multi_reduction <add>, %31, %cst_21 [1] : vector<4x32x128xf32> to vector<4x128xf32>
    %33 = arith.addf %27, %32 : vector<4x128xf32>
    %c0_22 = arith.constant 0 : index
    %c0_23 = arith.constant 0 : index
    %c0_24 = arith.constant 0 : index
    %34 = vector.load %arg6[%c0_22, %c0_23, %c0_24] : memref<1x4x128xf32, #tpu.memory_space<vmem>>, vector<1x4x128xf32>
    %35 = vector.shape_cast %34 : vector<1x4x128xf32> to vector<4x128xf32>
    %36 = vector.shape_cast %33 : vector<4x128xf32> to vector<1x4x128xf32>
    tpu.vector_store %arg6[%c0_22, %c0_23, %c0_24], %36 {strides = array<i32>} : memref<1x4x128xf32, #tpu.memory_space<vmem>>, vector<1x4x128xf32>,
    return
  }
  func.func @transform_0(%arg0: i32, %arg1: i32, %arg2: i32) -> (i32, i32, i32, i32) {
    %c1_i32 = arith.constant 1 : i32
    %0 = arith.muli %arg0, %c1_i32 : i32
    %1 = arith.addi %0, %arg2 : i32
    %c0_i32 = arith.constant 0 : i32
    %c0_i32_0 = arith.constant 0 : i32
    %c0_i32_1 = arith.constant 0 : i32
    return %arg1, %c0_i32, %1, %c0_i32_0 : i32, i32, i32, i32
  }
  func.func @transform_1(%arg0: i32, %arg1: i32, %arg2: i32) -> (i32, i32, i32, i32) {
    %c1_i32 = arith.constant 1 : i32
    %0 = arith.muli %arg0, %c1_i32 : i32
    %1 = arith.addi %0, %arg2 : i32
    %c0_i32 = arith.constant 0 : i32
    %c0_i32_0 = arith.constant 0 : i32
    %c0_i32_1 = arith.constant 0 : i32
    return %arg1, %c0_i32, %1, %c0_i32_0 : i32, i32, i32, i32
  }
  func.func @transform_2(%arg0: i32, %arg1: i32, %arg2: i32) -> (i32, i32, i32) {
    %c0_i32 = arith.constant 0 : i32
    %c0_i32_0 = arith.constant 0 : i32
    %c0_i32_1 = arith.constant 0 : i32
    return %arg0, %c0_i32, %c0_i32_0 : i32, i32, i32
  }
  func.func @transform_3(%arg0: i32, %arg1: i32, %arg2: i32) -> (i32, i32, i32) {
    %c0_i32 = arith.constant 0 : i32
    %c0_i32_0 = arith.constant 0 : i32
    %c0_i32_1 = arith.constant 0 : i32
    return %arg0, %c0_i32, %c0_i32_0 : i32, i32, i32
  }
}

</mosaic_0001>

<bundles_post_ra>
// kernel: tpu_custom_call.1
= control target key start
LH: loop header
LB: loop body
LE: loop exit
PB: predicated region body
PF: predicated region fallthrough
CT: control target
= control target key end

     0   :  { %9 = vsyncpa [#allocation3], 0  ;;  %s1548_s0 = inlined_call_operand.hbm [shape: bf16[2,4,32,128], index: 0, kind: input, shape index: {}]   ;;  %s1549_s1 = inlined_call_operand.hbm [shape: bf16[2,4,32,128], index: 1, kind: input, shape index: {}]   ;;  %s1550_s2 = inlined_call_operand.hbm [shape: f32[1,4,128], index: 2, kind: output, shape index: {0}]   ;;  %s1551_s3 = inlined_call_operand.hbm [shape: f32[1,4,128], index: 3, kind: output, shape index: {1}]  }
   0x1   :  { %11 = vsyncpa [#allocation3 + $0x1], 0 }
   0x2   :  { %12 = vsyncpa [#allocation6], 0 }
   0x3   :  { %14 = vsyncpa [#allocation6 + $0x1], 0 }
   0x4   :  { %15 = vsyncpa [#allocation4], 0 }
   0x5   :  { %16 = vsyncpa [#allocation9], 0  ;;  %s1146_s12 = smov 0   ;;  %s1148_s13 = smov 0  }
   0x6   :  { %s1150_s14 = smov 0   ;;  %s1152_s15 = smov 0  }
   0x7   :  { %s1154_s16 = smov 0   ;;  %s1156_s17 = smov 0  }
   0x8 LB: > { %s1552_s18 = sadd.s32 4294967295, %s1118_s17   ;;  %s37_s19 = sadd.s32 1, %s1114_s16  ;;  %s1118_s17 = sphi %s1156_s17, %s22_s17   ;;  %s1114_s16 = sphi %s1154_s16, %s1562_s16   ;;  %s1110_s15 = sphi %s1152_s15, %s1561_s15   ;;  %s1106_s14 = sphi %s1150_s14, %s1560_s14   ;;  %s1102_s13 = sphi %s1148_s13, %s1559_s13   ;;  %s1098_s12 = sphi %s1146_s12, %s1558_s12  }
   0x9   : > { %p39_p0 = scmp.ge.s32.totalorder %s37_s19, 2  ;;  %s52_s20 = sadd.s32 1, %s1106_s14 }
   0xa   : > { %p59_p1 = scmp.ne.s32.totalorder %s1106_s14, %s1102_s13  ;;  %p60_p2 = scmp.eq.s32.totalorder %s1118_s17, 0 }
   0xb   : > { %s1564_s19 = smov (%p39_p0, %s37_s19), 0  ;;  %p65_p4 = scmp.ne.s32.totalorder %s1102_s13, %s1098_s12 }
   0xc   : > { %p1182_p3 = por %p60_p2, %p59_p1  ;;  %s47_s22 = ssub.s32 %s1114_s16, %s1564_s19 }
   0xd   : > { %p66_p5 = scmp.eq.s32.totalorder %s1552_s18, 0  ;;  %p50_p6 = scmp.eq.s32.totalorder %s47_s22, 0 }
   0xe   : > { %p849_p8 = scmp.lt.s32.totalorder %s1118_s17, 2  ;;  %s1200_s25 = sand.u32 1, %s1106_s14  }
   0xf   : > { %p1191_p7 = por %p66_p5, %p65_p4  ;;  %s749_s26 = sshll.u32 %s1114_s16, 6 }
  0x10   : > { %s1197_s24 = scalar_select %p50_p6, %s1106_s14, %s52_s20  }
  0x11   : > { %s717_s27 = sshll.u32 %s1200_s25, 6  ;;  %s183_s30 = scalar_lea.hbm %s1548_s0, %s749_s26 }
  0x12   : > { %s184_s4 = sshll.u32 %s183_s30, 4  ;;  %s175_s5 = scalar_lea.vmem [#allocation2], %s717_s27  ;;  %s185_s4 = int_to_ptr.hbm [resolvable:$true] %s184_s4 }
  0x13   : > { %s186_s6 = sshll.u32 %s175_s5, 4  ;;  %p1209_p9 = pnand %p849_p8, %p1182_p3  ;;  %s187_s6 = int_to_ptr.vmem [resolvable:$true] %s186_s6 }
  0x14   : > { %p723_p10 = scmp.ge.s32.totalorder %s1118_s17, 1  ;;  %p219_p11 = scmp.lt.s32.totalorder %s1118_s17, 3 }
  0x15   : > { %s172_s8 = scalar_lea.sflag [#allocation3], %s1200_s25  ;;  %s1120_s9 = smov 64  }
  0x16   : > { %s1121_s10 = smov 4   ;;  %p220_p12 = pnand %p723_p10, %p219_p11 }
  0x17   : > { %845 = dma.hbm_to_vmem [thread:$0]  (!%p1209_p9), %s185_s4, 1024, %s187_s6, %s172_s8, %s1120_s9, %s1120_s9, %s1121_s10  }
  0x18   : > { %s208_s20 = scalar_lea.hbm %s1549_s1, %s749_s26  ;;  %s200_s21 = scalar_lea.vmem [#allocation5], %s717_s27 }
  0x19   : > { %s209_s22 = sshll.u32 %s208_s20, 4  ;;  %s211_s28 = sshll.u32 %s200_s21, 4  ;;  %s210_s22 = int_to_ptr.hbm [resolvable:$true] %s209_s22  ;;  %s212_s28 = int_to_ptr.vmem [resolvable:$true] %s211_s28 }
  0x1a   : > { %s197_s29 = scalar_lea.sflag [#allocation6], %s1200_s25  ;;  %223 = sbr.rel (%p220_p12) target bundleno = 115 (0x73), region = 28 }
  0x1b   : > { %848 = dma.hbm_to_vmem [thread:$0]  (!%p1209_p9), %s210_s22, 1024, %s212_s28, %s197_s29, %s1120_s9, %s1120_s9, %s1121_s10  }
  0x1c   : > { %s225_s30 = sand.u32 (!%p220_p12), 1, %s1102_s13  }
  0x1d   : > { %s724_s5 = sshll.u32 (!%p220_p12), %s225_s30, 6  ;;  %s226_s18 = scalar_lea.sflag (!%p220_p12), [#allocation3], %s225_s30 }
  0x1e   : > { %s229_s4 = scalar_lea.vmem (!%p220_p12), [#allocation2], %s724_s5 }
  0x1f   : > { %1081 = dma.done.wait (%p1191_p7), %s226_s18, 1024  }
  0x20   : > { %1083 = vsyncadd (%p1191_p7), %s226_s18, 4294966272  ;;  %s236_s26 = scalar_lea.sflag [#allocation6], %s225_s30  ;;  %s1229_s27 = scalar_lea.vmem [#allocation5], %s724_s5 }
  0x21   : > { %1085 = dma.done.wait (%p1191_p7), %s236_s26, 1024  }
  0x22   : > { %1087 = vsyncadd (%p1191_p7), %s236_s26, 4294966272  ;;  %p267_p13 = scmp.eq.s32.totalorder %s1110_s15, 0 }
  0x23   : > { %v1122_v0 = vmov (%p267_p13), 0.0  }
  0x24   : > { %272 = sbr.rel (!%p267_p13) target bundleno = 41 (0x29), region = 40  ;;  %273 = vst [vmem:[#allocation7] sm:$0xf] (%p267_p13), %v1122_v0 }
  0x25   : > { %274 = vst [vmem:[#allocation8] sm:$0xf] (%p267_p13), %v1122_v0 }
  0x29 PF: > { %v1236_v1 = vld [vmem:[%s229_s4] sm:$0xff]   ;;  %v1238_v2 = vld [vmem:[%s229_s4 + $0x8] sm:$0xff]   ;;  %v1240_v3 = vld [vmem:[%s229_s4 + $0x10] sm:$0xff]   ;;  %s1124_s15 = smov [#allocation7]   ;;  %s590_s6 = sshll.u32 %s1550_s2, 4  ;;  %s591_s6 = int_to_ptr.hbm [resolvable:$true] %s590_s6 }
  0x2a   : > { %v1242_v4 = vld [vmem:[%s229_s4 + $0x18] sm:$0xff]   ;;  %v1244_v5 = vld [vmem:[%s229_s4 + $0x20] sm:$0xff]   ;;  %v1246_v6 = vld [vmem:[%s229_s4 + $0x28] sm:$0xff]   ;;  %v754_v7 = vunpack.c.l.bf16 %v1236_v1  ;;  %v755_v8 = vunpack.c.h.bf16 %v1236_v1  ;;  %v758_v9 = vunpack.c.l.bf16 %v1238_v2  ;;  %v759_v10 = vunpack.c.h.bf16 %v1238_v2  ;;  %s588_s18 = sshll.u32 %s1124_s15, 4  ;;  %s1556_s7 = sadd.s32 4294967295, %s1118_s17   ;;  %s589_s18 = int_to_ptr.vmem [resolvable:$true] %s588_s18 }
  0x2b   : > { %v1252_v11 = vld [vmem:[%s229_s4 + $0x30] sm:$0xff]   ;;  %v1254_v12 = vld [vmem:[%s229_s4 + $0x38] sm:$0xff]   ;;  %v762_v13 = vunpack.c.l.bf16 %v1240_v3  ;;  %v763_v14 = vunpack.c.h.bf16 %v1240_v3  ;;  %v766_v15 = vunpack.c.l.bf16 %v1242_v4  ;;  %v767_v16 = vunpack.c.h.bf16 %v1242_v4  ;;  %v785_v17 = vld [vmem:[%s1229_s27] sm:$0xff]   ;;  %p1507_p0 = scmp.eq.s32.totalorder %s1556_s7, 1  ;;  %s1125_s9 = smov [#allocation8]  }
  0x2c   : > { %v823_v18 = vld [vmem:[%s1229_s27 + $0x8] sm:$0xff]   ;;  %v770_v19 = vunpack.c.l.bf16 %v1244_v5  ;;  %v771_v20 = vunpack.c.h.bf16 %v1244_v5  ;;  %v774_v21 = vunpack.c.l.bf16 %v1246_v6  ;;  %v775_v22 = vunpack.c.h.bf16 %v1246_v6  ;;  %v824_v23 = vld [vmem:[%s1229_s27 + $0x10] sm:$0xff]   ;;  %v825_v24 = vld [vmem:[%s1229_s27 + $0x18] sm:$0xff]   ;;  %s602_s10 = sshll.u32 %s1125_s9, 4  ;;  %s604_s20 = sshll.u32 %s1551_s3, 4  ;;  %s603_s10 = int_to_ptr.vmem [resolvable:$true] %s602_s10  ;;  %s605_s20 = int_to_ptr.hbm [resolvable:$true] %s604_s20 }
  0x2d   : > { %v778_v25 = vunpack.c.l.bf16 %v1252_v11  ;;  %v779_v26 = vunpack.c.h.bf16 %v1252_v11  ;;  %v782_v27 = vunpack.c.l.bf16 %v1254_v12  ;;  %v783_v28 = vunpack.c.h.bf16 %v1254_v12  ;;  %v826_v29 = vld [vmem:[%s1229_s27 + $0x20] sm:$0xff]   ;;  %v827_v30 = vld [vmem:[%s1229_s27 + $0x28] sm:$0xff]   ;;  %v828_v35 = vld [vmem:[%s1229_s27 + $0x30] sm:$0xff]  }
  0x2e   : > { %v1274_v31 = vunpack.c.l.bf16 %v785_v17  ;;  %v1276_v32 = vunpack.c.h.bf16 %v785_v17  ;;  %v1278_v33 = vunpack.c.l.bf16 %v823_v18  ;;  %v1280_v34 = vunpack.c.h.bf16 %v823_v18  ;;  %v829_v36 = vld [vmem:[%s1229_s27 + $0x38] sm:$0xff]  }
  0x2f   : > { %v1284_v37 = vunpack.c.l.bf16 %v824_v23  ;;  %v1286_v38 = vunpack.c.h.bf16 %v824_v23  ;;  %v1288_v39 = vunpack.c.l.bf16 %v825_v24  ;;  %v1290_v40 = vunpack.c.h.bf16 %v825_v24 }
  0x30   : > { %v1292_v41 = vunpack.c.l.bf16 %v826_v29  ;;  %v1294_v42 = vunpack.c.h.bf16 %v826_v29  ;;  %v1296_v43 = vunpack.c.l.bf16 %v827_v30  ;;  %v1298_v44 = vunpack.c.h.bf16 %v827_v30 }
  0x31   : > { %v1300_v45 = vunpack.c.l.bf16 %v828_v35  ;;  %v1302_v46 = vunpack.c.h.bf16 %v828_v35  ;;  %v1304_v47 = vunpack.c.l.bf16 %v829_v36  ;;  %v1306_v48 = vunpack.c.h.bf16 %v829_v36 }
  0x32   : > { %v339_v49 = vmul.f32 2.0, %v754_v7  ;;  %v340_v50 = vmul.f32 2.0, %v755_v8  ;;  %v341_v51 = vmul.f32 2.0, %v758_v9  ;;  %v342_v52 = vmul.f32 2.0, %v759_v10 }
  0x33   : > { %v343_v53 = vmul.f32 2.0, %v762_v13  ;;  %v344_v54 = vmul.f32 2.0, %v763_v14  ;;  %v345_v55 = vmul.f32 2.0, %v766_v15  ;;  %v346_v56 = vmul.f32 2.0, %v767_v16 }
  0x34   : > { %v347_v57 = vmul.f32 2.0, %v770_v19  ;;  %v348_v58 = vmul.f32 2.0, %v771_v20  ;;  %v349_v59 = vmul.f32 2.0, %v774_v21  ;;  %v350_v60 = vmul.f32 2.0, %v775_v22 }
  0x35   : > { %v351_v61 = vmul.f32 2.0, %v778_v25  ;;  %v352_v62 = vmul.f32 2.0, %v779_v26  ;;  %v353_v63 = vmul.f32 2.0, %v782_v27  ;;  %v354_v0 = vmul.f32 2.0, %v783_v28 }
  0x36   : > { %v1341_v17 = vmul.f32 %v1274_v31, %v339_v49  ;;  %v1344_v18 = vmul.f32 %v1276_v32, %v340_v50  ;;  %v1347_v23 = vmul.f32 %v1278_v33, %v341_v51  ;;  %v1350_v24 = vmul.f32 %v1280_v34, %v342_v52 }
  0x37   : > { %v1353_v29 = vmul.f32 %v1284_v37, %v343_v53  ;;  %v1356_v30 = vmul.f32 %v1286_v38, %v344_v54  ;;  %v1359_v35 = vmul.f32 %v1288_v39, %v345_v55  ;;  %v1362_v36 = vmul.f32 %v1290_v40, %v346_v56 }
  0x38   : > { %v1365_v49 = vmul.f32 %v1292_v41, %v347_v57  ;;  %v371_v50 = vadd.f32 %v1274_v31, %v754_v7  ;;  %v372_v51 = vadd.f32 %v1276_v32, %v755_v8  ;;  %v373_v52 = vadd.f32 %v1278_v33, %v758_v9 }
  0x39   : > { %v1377_v53 = vmul.f32 %v1294_v42, %v348_v58  ;;  %v1380_v54 = vmul.f32 %v1296_v43, %v349_v59  ;;  %v1383_v55 = vmul.f32 %v1298_v44, %v350_v60  ;;  %v374_v7 = vadd.f32 %v1280_v34, %v759_v10 }
  0x3a   : > { %v1389_v1 = vmul.f32 %v1300_v45, %v351_v61  ;;  %v1392_v8 = vmul.f32 %v1302_v46, %v352_v62  ;;  %v1395_v9 = vmul.f32 %v1304_v47, %v353_v63  ;;  %v375_v56 = vadd.f32 %v1284_v37, %v762_v13 }
  0x3b   : > { %v376_v57 = vadd.f32 %v1286_v38, %v763_v14  ;;  %v377_v2 = vadd.f32 %v1288_v39, %v766_v15  ;;  %v378_v10 = vadd.f32 %v1290_v40, %v767_v16  ;;  %v379_v58 = vadd.f32 %v1292_v41, %v770_v19 }
  0x3c   : > { %v380_v13 = vadd.f32 %v1294_v42, %v771_v20  ;;  %v387_v59 = vadd.f32 0.0001, %v371_v50  ;;  %v388_v3 = vadd.f32 0.0001, %v372_v51  ;;  %v389_v60 = vadd.f32 0.0001, %v373_v52 }
  0x3d   : > { %v381_v14 = vadd.f32 %v1296_v43, %v774_v21  ;;  %v382_v4 = vadd.f32 %v1298_v44, %v775_v22  ;;  %v383_v15 = vadd.f32 %v1300_v45, %v778_v25  ;;  %v390_v16 = vadd.f32 0.0001, %v374_v7 }
  0x3e   : > { %v384_v5 = vadd.f32 %v1302_v46, %v779_v26  ;;  %v385_v19 = vadd.f32 %v1304_v47, %v782_v27  ;;  %v391_v20 = vadd.f32 0.0001, %v375_v56  ;;  %908 = vrcp.f32 %v387_v59 }
  0x3f   : > { %v1431_v21 = vmul.f32 %v1306_v48, %v354_v0  ;;  %v386_v6 = vadd.f32 %v1306_v48, %v783_v28  ;;  %v392_v22 = vadd.f32 0.0001, %v376_v57  ;;  %910 = vrcp.f32 %v388_v3 }
  0x40   : > { %v393_v25 = vadd.f32 0.0001, %v377_v2  ;;  %v394_v61 = vadd.f32 0.0001, %v378_v10  ;;  %v395_v11 = vadd.f32 0.0001, %v379_v58  ;;  %912 = vrcp.f32 %v389_v60 }
  0x41   : > { %v396_v26 = vadd.f32 0.0001, %v380_v13  ;;  %v397_v62 = vadd.f32 0.0001, %v381_v14  ;;  %v398_v63 = vadd.f32 0.0001, %v382_v4  ;;  %914 = vrcp.f32 %v390_v16 }
  0x42   : > { %v399_v27 = vadd.f32 0.0001, %v383_v15  ;;  %v400_v50 = vadd.f32 0.0001, %v384_v5  ;;  %v401_v51 = vadd.f32 0.0001, %v385_v19  ;;  %916 = vrcp.f32 %v391_v20 }
  0x43   : > { %v402_v0 = vadd.f32 0.0001, %v386_v6  ;;  %918 = vrcp.f32 %v392_v22  ;;  %vm486_vm0 = vcmp.eq.f32.partialorder %v1274_v31, 1.0  ;;  %vm487_vm1 = vcmp.eq.f32.partialorder %v1276_v32, 1.0 }
  0x44   : > { %v909_v12 = vpop.eup %908  ;;  %920 = vrcp.f32 %v393_v25  ;;  %vm488_vm2 = vcmp.eq.f32.partialorder %v1278_v33, 1.0  ;;  %vm489_vm3 = vcmp.eq.f32.partialorder %v1280_v34, 1.0  ;;  %vm490_vm4 = vcmp.eq.f32.partialorder %v1284_v37, 1.0 }
  0x45   : > { %v911_v28 = vpop.eup %910  ;;  %922 = vrcp.f32 %v394_v61  ;;  %v419_v52 = vmul.f32 %v909_v12, %v1341_v17  ;;  %vm491_vm5 = vcmp.eq.f32.partialorder %v1286_v38, 1.0  ;;  %vm492_vm6 = vcmp.eq.f32.partialorder %v1288_v39, 1.0 }
  0x46   : > { %v913_v7 = vpop.eup %912  ;;  %924 = vrcp.f32 %v395_v11  ;;  %v420_v56 = vmul.f32 %v911_v28, %v1344_v18  ;;  %vm493_vm7 = vcmp.eq.f32.partialorder %v1290_v40, 1.0  ;;  %vm494_vm8 = vcmp.eq.f32.partialorder %v1292_v41, 1.0 }
  0x47   : > { %v915_v57 = vpop.eup %914  ;;  %926 = vrcp.f32 %v396_v26  ;;  %v421_v2 = vmul.f32 %v913_v7, %v1347_v23  ;;  %vm495_vm9 = vcmp.eq.f32.partialorder %v1294_v42, 1.0  ;;  %vm496_vm10 = vcmp.eq.f32.partialorder %v1296_v43, 1.0 }
  0x48   : > { %v917_v17 = vpop.eup %916  ;;  %928 = vrcp.f32 %v397_v62  ;;  %v422_v10 = vmul.f32 %v915_v57, %v1350_v24  ;;  %v436_v58 = vadd.f32 %v420_v56, %v419_v52  ;;  %vm497_vm11 = vcmp.eq.f32.partialorder %v1298_v44, 1.0 }
  0x49   : > { %vm498_vm12 = vcmp.eq.f32.partialorder %v1300_v45, 1.0  ;;  %v919_v18 = vpop.eup %918  ;;  %930 = vrcp.f32 %v398_v63  ;;  %v423_v13 = vmul.f32 %v917_v17, %v1353_v29  ;;  %vm499_vm13 = vcmp.eq.f32.partialorder %v1302_v46, 1.0 }
  0x4a   : > { %v921_v23 = vpop.eup %920  ;;  %932 = vrcp.f32 %v399_v27  ;;  %v424_v59 = vmul.f32 %v919_v18, %v1356_v30  ;;  %v437_v3 = vadd.f32 %v436_v58, %v421_v2  ;;  %vm500_vm14 = vcmp.eq.f32.partialorder %v1304_v47, 1.0 }
  0x4b   : > { %v923_v60 = vpop.eup %922  ;;  %934 = vrcp.f32 %v400_v50  ;;  %v425_v24 = vmul.f32 %v921_v23, %v1359_v35  ;;  %vm501_vm15 = vcmp.eq.f32.partialorder %v1306_v48, 1.0  ;;  %v1123_v14 = vmov 0.0  }
  0x4c   : > { %v727_v4 = vsel %vm486_vm0, 1.0, %v1123_v14  ;;  %v728_v29 = vsel %vm487_vm1, 1.0, %v1123_v14  ;;  %v925_v15 = vpop.eup %924  ;;  %936 = vrcp.f32 %v401_v51  ;;  %v426_v30 = vmul.f32 %v923_v60, %v1362_v36 }
  0x4d   : > { %v438_v16 = vadd.f32 %v437_v3, %v422_v10  ;;  %v445_v5 = vadd.f32 %v424_v59, %v423_v13  ;;  %v927_v19 = vpop.eup %926  ;;  %938 = vrcp.f32 %v402_v0  ;;  %v427_v20 = vmul.f32 %v925_v15, %v1365_v49 }
  0x4e   : > { %v729_v35 = vsel %vm488_vm2, 1.0, %v1123_v14  ;;  %v730_v31 = vsel %vm489_vm3, 1.0, %v1123_v14  ;;  %v929_v6 = vpop.eup %928  ;;  %v428_v32 = vmul.f32 %v927_v19, %v1377_v53  ;;  %v731_v36 = vsel %vm490_vm4, 1.0, %v1123_v14 }
  0x4f   : > { %v439_v22 = vrot.slane %v438_v16, 4  ;;  %v446_v25 = vadd.f32 %v445_v5, %v425_v24  ;;  %v931_v61 = vpop.eup %930  ;;  %v429_v11 = vmul.f32 %v929_v6, %v1380_v54  ;;  %v732_v49 = vsel %vm491_vm5, 1.0, %v1123_v14 }
  0x50   : > { %v733_v33 = vsel %vm492_vm6, 1.0, %v1123_v14  ;;  %v734_v34 = vsel %vm493_vm7, 1.0, %v1123_v14  ;;  %v933_v26 = vpop.eup %932  ;;  %v430_v53 = vmul.f32 %v931_v61, %v1383_v55  ;;  %v454_v27 = vadd.f32 %v428_v32, %v427_v20 }
  0x51   : > { %v440_v62 = vadd.f32 %v439_v22, %v438_v16  ;;  %v447_v63 = vadd.f32 %v446_v25, %v426_v30  ;;  %v935_v37 = vpop.eup %934  ;;  %v431_v50 = vmul.f32 %v933_v26, %v1389_v1  ;;  %v735_v54 = vsel %vm494_vm8, 1.0, %v1123_v14 }
  0x52   : > { %v736_v38 = vsel %vm495_vm9, 1.0, %v1123_v14  ;;  %v737_v39 = vsel %vm496_vm10, 1.0, %v1123_v14  ;;  %v937_v40 = vpop.eup %936  ;;  %v432_v51 = vmul.f32 %v935_v37, %v1392_v8  ;;  %v455_v12 = vadd.f32 %v454_v27, %v429_v11 }
  0x53   : > { %v441_v0 = vrot.slane %v440_v62, 2  ;;  %v448_v55 = vrot.slane %v447_v63, 4  ;;  %v939_v28 = vpop.eup %938  ;;  %v433_v52 = vmul.f32 %v937_v40, %v1395_v9  ;;  %v738_v1 = vsel %vm497_vm11, 1.0, %v1123_v14 }
  0x54   : > { %v739_v41 = vsel %vm498_vm12, 1.0, %v1123_v14  ;;  %v740_v42 = vsel %vm499_vm13, 1.0, %v1123_v14  ;;  %v456_v56 = vadd.f32 %v455_v12, %v430_v53  ;;  %v741_v8 = vsel %vm500_vm14, 1.0, %v1123_v14 }
  0x55   : > { %v442_v43 = vadd.f32 %v441_v0, %v440_v62  ;;  %v449_v7 = vadd.f32 %v448_v55, %v447_v63  ;;  %v434_v57 = vmul.f32 %v939_v28, %v1431_v21  ;;  %v463_v2 = vadd.f32 %v432_v51, %v431_v50  ;;  %v435_v28 = vld [vmem:[#allocation7] sm:$0xf] }
  0x56   : > { %v534_v17 = vadd.f32 %v728_v29, %v727_v4  ;;  %v543_v9 = vadd.f32 %v732_v49, %v731_v36  ;;  %v457_v44 = vrot.slane %v456_v56, 4  ;;  %v742_v45 = vsel %vm501_vm15, 1.0, %v1123_v14 }
  0x57   : > { %v450_v10 = vrot.slane %v449_v7, 2  ;;  %v552_v58 = vadd.f32 %v736_v38, %v735_v54  ;;  %v464_v18 = vadd.f32 %v463_v2, %v433_v52  ;;  %v561_v23 = vadd.f32 %v740_v42, %v739_v41 }
  0x58   : > { %v535_v46 = vadd.f32 %v729_v35, %v534_v17  ;;  %v544_v13 = vadd.f32 %v733_v33, %v543_v9  ;;  %v443_v59 = vrot.slane %v442_v43, 1  ;;  %v458_v60 = vadd.f32 %v457_v44, %v456_v56  ;;  %v485_v56 = vld [vmem:[#allocation8] sm:$0xf] }
  0x59   : > { %v451_v3 = vadd.f32 %v450_v10, %v449_v7  ;;  %v553_v47 = vadd.f32 %v737_v39, %v552_v58  ;;  %v465_v24 = vadd.f32 %v464_v18, %v434_v57  ;;  %v562_v30 = vadd.f32 %v741_v8, %v561_v23 }
  0x5a   : > { %v536_v15 = vadd.f32 %v730_v31, %v535_v46  ;;  %v545_v21 = vadd.f32 %v734_v34, %v544_v13  ;;  %v459_v29 = vrot.slane %v458_v60, 2  ;;  %vm476_vm0 = vcmask 1041409  }
  0x5b   : > { %v452_v4 = vrot.slane %v451_v3, 1  ;;  %v554_v16 = vadd.f32 %v738_v1, %v553_v47  ;;  %v466_v5 = vrot.slane %v465_v24, 4  ;;  %v563_v19 = vadd.f32 %v742_v45, %v562_v30 }
  0x5c   : > { %v537_v48 = vrot.slane %v536_v15, 4  ;;  %v546_v14 = vrot.slane %v545_v21, 4  ;;  %v444_v20 = vadd.f32 %v443_v59, %v442_v43  ;;  %v460_v6 = vadd.f32 %v459_v29, %v458_v60 }
  0x5d   : > { %v453_v35 = vadd.f32 %v452_v4, %v451_v3  ;;  %v555_v32 = vrot.slane %v554_v16, 4  ;;  %v467_v22 = vadd.f32 %v466_v5, %v465_v24  ;;  %v564_v61 = vrot.slane %v563_v19, 4 }
  0x5e   : > { %v538_v25 = vadd.f32 %v537_v48, %v536_v15  ;;  %v547_v36 = vadd.f32 %v546_v14, %v545_v21  ;;  %v461_v11 = vrot.slane %v460_v6, 1  ;;  %vm478_vm1 = vcmask 1042434  }
  0x5f   : > { %v556_v31 = vadd.f32 %v555_v32, %v554_v16  ;;  %v468_v49 = vrot.slane %v467_v22, 2  ;;  %v565_v26 = vadd.f32 %v564_v61, %v563_v19  ;;  %v477_v62 = vsel %vm476_vm0, %v453_v35, %v444_v20 }
  0x60   : > { %v539_v33 = vrot.slane %v538_v25, 2  ;;  %v548_v34 = vrot.slane %v547_v36, 2  ;;  %v462_v53 = vadd.f32 %v461_v11, %v460_v6  ;;  %vm480_vm2 = vcmask 1043459  }
  0x61   : > { %v557_v63 = vrot.slane %v556_v31, 2  ;;  %v469_v27 = vadd.f32 %v468_v49, %v467_v22  ;;  %v566_v54 = vrot.slane %v565_v26, 2 }
  0x62   : > { %v540_v37 = vadd.f32 %v539_v33, %v538_v25  ;;  %v549_v50 = vadd.f32 %v548_v34, %v547_v36  ;;  %v479_v55 = vsel %vm478_vm1, %v462_v53, %v477_v62 }
  0x63   : > { %v558_v38 = vadd.f32 %v557_v63, %v556_v31  ;;  %v470_v39 = vrot.slane %v469_v27, 1  ;;  %v567_v0 = vadd.f32 %v566_v54, %v565_v26 }
  0x64   : > { %v541_v40 = vrot.slane %v540_v37, 1  ;;  %v550_v51 = vrot.slane %v549_v50, 1 }
  0x65   : > { %v559_v12 = vrot.slane %v558_v38, 1  ;;  %v471_v52 = vadd.f32 %v470_v39, %v469_v27  ;;  %v568_v42 = vrot.slane %v567_v0, 1 }
  0x66   : > { %v542_v1 = vadd.f32 %v541_v40, %v540_v37  ;;  %v551_v41 = vadd.f32 %v550_v51, %v549_v50 }
  0x67   : > { %v560_v43 = vadd.f32 %v559_v12, %v558_v38  ;;  %v481_v7 = vsel %vm480_vm2, %v471_v52, %v479_v55  ;;  %v569_v8 = vadd.f32 %v568_v42, %v567_v0 }
  0x68   : > { %v574_v57 = vsel %vm476_vm0, %v551_v41, %v542_v1  ;;  %v483_v2 = vadd.f32 %v481_v7, %v435_v28 }
  0x69   : > { %v575_v17 = vsel %vm478_vm1, %v560_v43, %v574_v57 }
  0x6a   : > { %v576_v9 = vsel %vm480_vm2, %v569_v8, %v575_v17  ;;  %484 = vst [vmem:[#allocation7] sm:$0xf] %v483_v2 }
  0x6b   : > { %v578_v10 = vadd.f32 %v576_v9, %v485_v56  ;;  %835 = dma.vmem_to_hbm [thread:$0]  (%p1507_p0), %s589_s18, 64, %s591_s6, [#allocation4]  }
  0x6d   : > { %579 = vst [vmem:[#allocation8] sm:$0xf] %v578_v10 }
  0x6e   : > { %837 = dma.vmem_to_hbm [thread:$0]  (%p1507_p0), %s603_s10, 64, %s605_s20, [#allocation9]  }
  0x6f   : > { %1089 = dma.done.wait (%p1507_p0), [#allocation4], 64  }
  0x70   : > { %1091 = vsyncadd (%p1507_p0), [#allocation4], 4294967232 }
  0x71   : > { %1093 = dma.done.wait (%p1507_p0), [#allocation9], 64  }
  0x72   : > { %1095 = vsyncadd (%p1507_p0), [#allocation9], 4294967232 }
  0x73 PF: > { %s22_s17 = sadd.s32 1, %s1118_s17   ;;  %s1558_s12 = smov %s1102_s13 }
  0x74   : > { %p19_p1 = scmp.ge.s32.totalorder %s22_s17, 4   ;;  %s1559_s13 = smov %s1106_s14 }
  0x75   : > { %s1560_s14 = smov %s1197_s24  ;;  %s1561_s15 = smov %s1114_s16 }
  0x76   : > { %s1562_s16 = smov %s1564_s19  ;;  %21 = sbr.rel (!%p19_p1) target bundleno = 8 (0x8), region = 92 }
  0x7b   :  { %623 = vsyncpa [#allocation3], 1 }
  0x7c   :  { %625 = vsyncpa [#allocation3 + $0x1], 1 }
  0x7d   :  { %626 = vsyncpa [#allocation6], 1 }
  0x7e   :  { %628 = vsyncpa [#allocation6 + $0x1], 1 }
  0x7f   :  { %629 = vsyncpa [#allocation4], 1 }
  0x80   :  { %631 = vsyncpa [#allocation4 + $0x1], 1 }
  0x81   :  { %632 = vsyncpa [#allocation9], 1 }

</bundles_post_ra>
